<compile_context>
chip_gen: v7x
topology: tpu7x:2x2x1
jax: 0.10.0
libtpu: 0.0.40
codegen_flags: <defaults>
</compile_context>

<pallas_src>
import functools

import jax
import jax.numpy as jnp
import numpy as np
from jax.experimental import pallas as pl
from jax.experimental.pallas import tpu as pltpu


def gru_fc_kernel(*refs, T, Bp, B, H, apply_mask):
    if apply_mask:
        x_ref, w_ref, u_ref, b_ref, fcw_ref, fcb_ref, mask_ref, out_ref = refs
    else:
        x_ref, w_ref, u_ref, b_ref, fcw_ref, fcb_ref, out_ref = refs
        mask_ref = None

    H3 = 3 * H
    b = b_ref[...]                                                   # (1, 4H) f32

    # ---- Hoisted input projection: ONE fused bf16 matmul, gi bias folded in once. ----
    # gi layout matches PyTorch: [gi_r | gi_z | gi_n] along lanes.
    gi = jnp.dot(x_ref[...], w_ref[...],
                 preferred_element_type=jnp.float32) + b[:, :H3]     # (T*Bp, 3H) f32

    u = u_ref[...]                                                   # (H, 3H) bf16
    # Broadcast b_hn to (Bp, H) exactly once (JAX does not CSE broadcast_in_dim).
    bhn = jnp.broadcast_to(b[:, H3:H3 + H], (Bp, H))                 # (Bp, H) f32

    # ---- Reverse-direction GRU recurrence, fully unrolled (T static & small). ----
    # One fused (Bp, H) x (H, 3H) bf16 MXU pass per step; gate extraction is static
    # lane slices (XLU) that overlap the EUP sigmoid/tanh.
    h = jnp.zeros((Bp, H), dtype=jnp.float32)
    for t in range(T):
        lo = (T - 1 - t) * Bp                       # reverse time, 8-sublane aligned
        gh = jnp.dot(h.astype(jnp.bfloat16), u,
                     preferred_element_type=jnp.float32)             # (Bp, 3H)
        gi_t = gi[lo:lo + Bp, :]                                     # static slice
        rz = jax.nn.sigmoid(gi_t[:, :2 * H] + gh[:, :2 * H])
        r = rz[:, :H]
        z = rz[:, H:2 * H]
        n = jnp.tanh(gi_t[:, 2 * H:] + r * (gh[:, 2 * H:] + bhn))
        h = (1.0 - z) * n + z * h

    # ---- Dropout mask (training only) + fully-connected head. ----
    if apply_mask:
        h = h * mask_ref[...]
    out = jnp.dot(h.astype(jnp.bfloat16), fcw_ref[...],
                  preferred_element_type=jnp.float32) + fcb_ref[...]  # (Bp, O)
    out_ref[...] = out[:B, :].astype(out_ref.dtype)


def pack_params(params):
    """One-time parameter packing (keeps per-call work to just the pallas_call)."""
    H = params["w_hh"].shape[1]
    O = params["fc_w"].shape[0]
    w_ih = params["w_ih"].astype(jnp.float32)                        # (3H, I)
    w_hh = params["w_hh"].astype(jnp.float32)                        # (3H, H)
    b_ih = params["b_ih"].astype(jnp.float32)                        # (3H,)
    b_hh = params["b_hh"].astype(jnp.float32)                        # (3H,)

    # Fused weight slabs, gate order [r | z | n] preserved along lanes; bf16 so every
    # MXU dot in the kernel is single-pass.
    w_all = w_ih.T.astype(jnp.bfloat16)                              # (I, 3H)
    u_all = w_hh.T.astype(jnp.bfloat16)                              # (H, 3H)

    # Single (1, 4H) bias slab: [b_ir+b_hr | b_iz+b_hz | b_in | b_hn].
    # b_hn is kept separate because PyTorch's GRU uses n = tanh(gi_n + r*(h@U_n + b_hn)).
    b4 = jnp.concatenate([
        b_ih[0:H] + b_hh[0:H],
        b_ih[H:2 * H] + b_hh[H:2 * H],
        b_ih[2 * H:3 * H],
        b_hh[2 * H:3 * H],
    ]).reshape(1, 4 * H).astype(jnp.float32)

    fcw = params["fc_w"].T.astype(jnp.bfloat16)                      # (H, O)
    fcb = params["fc_b"].reshape(1, O).astype(jnp.float32)           # (1, O)
    return dict(w_all=w_all, u_all=u_all, b4=b4, fcw=fcw, fcb=fcb)


@functools.partial(jax.jit, static_argnames=("training",))
def rnn_classifier_forward(x, packed, dropout_mask, training=True):
    """x: (B, T, I) batch-first. packed: output of pack_params. Returns (B, O) f32."""
    B, T, I = x.shape
    H = packed["u_all"].shape[0]
    O = packed["fcw"].shape[1]
    Bp = ((B + 7) // 8) * 8                      # pad batch to the f32 sublane count

    # Time-major, batch padded to Bp sublanes, flattened to one (T*Bp, I) slab so the
    # kernel does a single hoisted input projection. No time flip: the kernel indexes
    # the reverse direction with static offsets.
    # TODO(synk): could fuse this transpose/pad/reshape into the pallas_call via
    # CompilerParams(allow_input_fusion=...) if the extra XLA op ever shows up.
    x_tm = jnp.transpose(x, (1, 0, 2)).astype(jnp.bfloat16)          # (T, B, I)
    x_tm = jnp.pad(x_tm, ((0, 0), (0, Bp - B), (0, 0)))
    x2d = x_tm.reshape(T * Bp, I)

    operands = [x2d, packed["w_all"], packed["u_all"], packed["b4"],
                packed["fcw"], packed["fcb"]]
    if training:
        mask = jnp.pad(dropout_mask.astype(jnp.float32), ((0, Bp - B), (0, 0)))
        operands.append(mask)

    vmem = pl.BlockSpec(memory_space=pltpu.MemorySpace.VMEM)
    kernel = functools.partial(gru_fc_kernel, T=T, Bp=Bp, B=B, H=H,
                               apply_mask=training)
    return pl.pallas_call(
        kernel,
        out_shape=jax.ShapeDtypeStruct((B, O), jnp.float32),
        in_specs=[vmem] * len(operands),
        out_specs=vmem,
    )(*operands)


def reference_forward(x, params, dropout_mask, training=True):
    """Pure-JAX f32 reference for the same semantics (reverse-dir GRU + dropout + FC)."""
    B, T, I = x.shape
    H = params["w_hh"].shape[1]
    wih_t = params["w_ih"].T
    whh_t = params["w_hh"].T
    bih = params["b_ih"][None, :]
    bhh = params["b_hh"][None, :]

    h = jnp.zeros((B, H), jnp.float32)
    for t in range(T - 1, -1, -1):
        x_t = x[:, t, :]
        gi = x_t @ wih_t + bih
        gh = h @ whh_t + bhh
        r = jax.nn.sigmoid(gi[:, 0:H] + gh[:, 0:H])
        z = jax.nn.sigmoid(gi[:, H:2 * H] + gh[:, H:2 * H])
        n = jnp.tanh(gi[:, 2 * H:3 * H] + r * gh[:, 2 * H:3 * H])
        h = (1.0 - z) * n + z * h
    mask = dropout_mask if training else jnp.ones_like(dropout_mask)
    return h * mask @ params["fc_w"].T + params["fc_b"][None, :]


def init_params(key, input_size, hidden_size, output_size):
    """Deterministic synthetic parameters matching the PyTorch shapes (reverse-dir GRU)."""
    k = jax.random.split(key, 6)
    orth = jax.nn.initializers.orthogonal()
    xav = jax.nn.initializers.glorot_normal()
    w_ih = orth(k[0], (3 * hidden_size, input_size), jnp.float32)     # (3H, I)
    w_hh = orth(k[1], (3 * hidden_size, hidden_size), jnp.float32)    # (3H, H)
    b_ih = jax.random.normal(k[2], (3 * hidden_size,), jnp.float32)
    b_hh = jax.random.normal(k[3], (3 * hidden_size,), jnp.float32)
    fc_w = xav(k[4], (output_size, hidden_size), jnp.float32)         # (O, H)
    fc_b = jax.random.normal(k[5], (output_size,), jnp.float32)
    return dict(w_ih=w_ih, w_hh=w_hh, b_ih=b_ih, b_hh=b_hh, fc_w=fc_w, fc_b=fc_b)


if __name__ == "__main__":
    # Small shapes consistent with the module: batch=2, seq=8, input=4, hidden=32, out=2
    B, T, I, H, O = 2, 8, 4, 32, 2
    key = jax.random.PRNGKey(0)
    k_x, k_p, k_d = jax.random.split(key, 3)

    x = jax.random.normal(k_x, (B, T, I), jnp.float32)                # (batch, seq, input)
    params = init_params(k_p, I, H, O)
    packed = jax.tree.map(jax.block_until_ready, pack_params(params)) # one-time packing

    # Deterministic dropout mask (p=0.5, inverted-dropout scaling), mirrors
    # F.dropout(training=True). The RNG itself has no in-kernel equivalent; the mask is
    # supplied externally.
    keep = jax.random.bernoulli(k_d, 0.5, (B, H)).astype(jnp.float32)
    dropout_mask = keep / 0.5

    out = rnn_classifier_forward(x, packed, dropout_mask, training=True)
    out = jax.block_until_ready(out)

    # Kernel uses single-pass bf16 MXU dots (f32 accumulate); reference is full f32,
    # so tolerances are loosened accordingly.
    ref = reference_forward(x, params, dropout_mask, training=True)
    np.testing.assert_allclose(np.asarray(out), np.asarray(ref), rtol=5e-2, atol=5e-2)

    # Also check eval mode (dropout disabled; mask operand dropped entirely).
    out_eval = jax.block_until_ready(
        rnn_classifier_forward(x, packed, dropout_mask, training=False))
    ref_eval = reference_forward(x, params, dropout_mask, training=False)
    np.testing.assert_allclose(np.asarray(out_eval), np.asarray(ref_eval),
                               rtol=5e-2, atol=5e-2)

    assert out.shape == (B, O) and out.dtype == jnp.float32
    print("KERNEL_OK")
</pallas_src>

<mosaic_0001>
module attributes {stable_mosaic.version = 11 : i64} {
  func.func @gru_fc_kernel(%arg0: memref<64x4xbf16, #tpu.memory_space<vmem>>, %arg1: memref<4x96xbf16, #tpu.memory_space<vmem>>, %arg2: memref<32x96xbf16, #tpu.memory_space<vmem>>, %arg3: memref<1x128xf32, #tpu.memory_space<vmem>>, %arg4: memref<32x2xbf16, #tpu.memory_space<vmem>>, %arg5: memref<1x2xf32, #tpu.memory_space<vmem>>, %arg6: memref<8x32xf32, #tpu.memory_space<vmem>>, %arg7: memref<2x2xf32, #tpu.memory_space<vmem>>) attributes {dimension_semantics = [], scalar_prefetch = 0 : i64, scratch_operands = 0 : i64, tpu.core_type = #tpu.core_type<tc>} {
    %c0 = arith.constant 0 : index
    %c0_0 = arith.constant 0 : index
    %0 = vector.load %arg3[%c0, %c0_0] : memref<1x128xf32, #tpu.memory_space<vmem>>, vector<1x128xf32>
    %c0_1 = arith.constant 0 : index
    %c0_2 = arith.constant 0 : index
    %1 = vector.load %arg0[%c0_1, %c0_2] : memref<64x4xbf16, #tpu.memory_space<vmem>>, vector<64x4xbf16>
    %c0_3 = arith.constant 0 : index
    %c0_4 = arith.constant 0 : index
    %2 = vector.load %arg1[%c0_3, %c0_4] : memref<4x96xbf16, #tpu.memory_space<vmem>>, vector<4x96xbf16>
    %cst = arith.constant dense<0.000000e+00> : vector<64x96xf32>
    %3 = tpu.matmul %1, %2, %cst {dimension_numbers = #tpu.dot_dimension_numbers<[1], [0], [0], [1], [0, 0, 1, 1], [], []>} : vector<64x4xbf16>, vector<4x96xbf16>, vector<64x96xf32> -> vector<64x96xf32>
    %4 = vector.extract_strided_slice %0 {offsets = [0, 0], sizes = [1, 96], strides = [1, 1]} : vector<1x128xf32> to vector<1x96xf32>
    %5 = vector.broadcast %4 : vector<1x96xf32> to vector<64x96xf32>
    %6 = arith.addf %3, %5 : vector<64x96xf32>
    %c0_5 = arith.constant 0 : index
    %c0_6 = arith.constant 0 : index
    %7 = vector.load %arg2[%c0_5, %c0_6] : memref<32x96xbf16, #tpu.memory_space<vmem>>, vector<32x96xbf16>
    %8 = vector.extract_strided_slice %0 {offsets = [0, 96], sizes = [1, 32], strides = [1, 1]} : vector<1x128xf32> to vector<1x32xf32>
    %9 = vector.shape_cast %8 : vector<1x32xf32> to vector<1x32xf32>
    %10 = vector.broadcast %9 : vector<1x32xf32> to vector<8x32xf32>
    %cst_7 = arith.constant 0.000000e+00 : f32
    %11 = vector.broadcast %cst_7 : f32 to vector<8x32xf32>
    %12 = arith.truncf %11 : vector<8x32xf32> to vector<8x32xbf16>
    %cst_8 = arith.constant dense<0.000000e+00> : vector<8x96xf32>
    %13 = tpu.matmul %12, %7, %cst_8 {dimension_numbers = #tpu.dot_dimension_numbers<[1], [0], [0], [1], [0, 0, 1, 1], [], []>} : vector<8x32xbf16>, vector<32x96xbf16>, vector<8x96xf32> -> vector<8x96xf32>
    %14 = vector.extract_strided_slice %6 {offsets = [56, 0], sizes = [8, 96], strides = [1, 1]} : vector<64x96xf32> to vector<8x96xf32>
    %15 = vector.extract_strided_slice %14 {offsets = [0, 0], sizes = [8, 64], strides = [1, 1]} : vector<8x96xf32> to vector<8x64xf32>
    %16 = vector.extract_strided_slice %13 {offsets = [0, 0], sizes = [8, 64], strides = [1, 1]} : vector<8x96xf32> to vector<8x64xf32>
    %17 = arith.addf %15, %16 : vector<8x64xf32>
    %18 = arith.negf %17 : vector<8x64xf32>
    %19 = math.exp %18 : vector<8x64xf32>
    %cst_9 = arith.constant 1.000000e+00 : f32
    %20 = vector.broadcast %cst_9 : f32 to vector<8x64xf32>
    %21 = arith.addf %20, %19 : vector<8x64xf32>
    %22 = arith.divf %20, %21 : vector<8x64xf32>
    %23 = vector.extract_strided_slice %22 {offsets = [0, 0], sizes = [8, 32], strides = [1, 1]} : vector<8x64xf32> to vector<8x32xf32>
    %24 = vector.extract_strided_slice %22 {offsets = [0, 32], sizes = [8, 32], strides = [1, 1]} : vector<8x64xf32> to vector<8x32xf32>
    %25 = vector.extract_strided_slice %14 {offsets = [0, 64], sizes = [8, 32], strides = [1, 1]} : vector<8x96xf32> to vector<8x32xf32>
    %26 = vector.extract_strided_slice %13 {offsets = [0, 64], sizes = [8, 32], strides = [1, 1]} : vector<8x96xf32> to vector<8x32xf32>
    %27 = arith.addf %26, %10 : vector<8x32xf32>
    %28 = arith.mulf %23, %27 : vector<8x32xf32>
    %29 = arith.addf %25, %28 : vector<8x32xf32>
    %30 = math.tanh %29 : vector<8x32xf32>
    %cst_10 = arith.constant 1.000000e+00 : f32
    %31 = vector.broadcast %cst_10 : f32 to vector<8x32xf32>
    %32 = arith.subf %31, %24 : vector<8x32xf32>
    %33 = arith.mulf %32, %30 : vector<8x32xf32>
    %34 = arith.mulf %24, %11 : vector<8x32xf32>
    %35 = arith.addf %33, %34 : vector<8x32xf32>
    %36 = arith.truncf %35 : vector<8x32xf32> to vector<8x32xbf16>
    %cst_11 = arith.constant dense<0.000000e+00> : vector<8x96xf32>
    %37 = tpu.matmul %36, %7, %cst_11 {dimension_numbers = #tpu.dot_dimension_numbers<[1], [0], [0], [1], [0, 0, 1, 1], [], []>} : vector<8x32xbf16>, vector<32x96xbf16>, vector<8x96xf32> -> vector<8x96xf32>
    %38 = vector.extract_strided_slice %6 {offsets = [48, 0], sizes = [8, 96], strides = [1, 1]} : vector<64x96xf32> to vector<8x96xf32>
    %39 = vector.extract_strided_slice %38 {offsets = [0, 0], sizes = [8, 64], strides = [1, 1]} : vector<8x96xf32> to vector<8x64xf32>
    %40 = vector.extract_strided_slice %37 {offsets = [0, 0], sizes = [8, 64], strides = [1, 1]} : vector<8x96xf32> to vector<8x64xf32>
    %41 = arith.addf %39, %40 : vector<8x64xf32>
    %42 = arith.negf %41 : vector<8x64xf32>
    %43 = math.exp %42 : vector<8x64xf32>
    %cst_12 = arith.constant 1.000000e+00 : f32
    %44 = vector.broadcast %cst_12 : f32 to vector<8x64xf32>
    %45 = arith.addf %44, %43 : vector<8x64xf32>
    %46 = arith.divf %44, %45 : vector<8x64xf32>
    %47 = vector.extract_strided_slice %46 {offsets = [0, 0], sizes = [8, 32], strides = [1, 1]} : vector<8x64xf32> to vector<8x32xf32>
    %48 = vector.extract_strided_slice %46 {offsets = [0, 32], sizes = [8, 32], strides = [1, 1]} : vector<8x64xf32> to vector<8x32xf32>
    %49 = vector.extract_strided_slice %38 {offsets = [0, 64], sizes = [8, 32], strides = [1, 1]} : vector<8x96xf32> to vector<8x32xf32>
    %50 = vector.extract_strided_slice %37 {offsets = [0, 64], sizes = [8, 32], strides = [1, 1]} : vector<8x96xf32> to vector<8x32xf32>
    %51 = arith.addf %50, %10 : vector<8x32xf32>
    %52 = arith.mulf %47, %51 : vector<8x32xf32>
    %53 = arith.addf %49, %52 : vector<8x32xf32>
    %54 = math.tanh %53 : vector<8x32xf32>
    %cst_13 = arith.constant 1.000000e+00 : f32
    %55 = vector.broadcast %cst_13 : f32 to vector<8x32xf32>
    %56 = arith.subf %55, %48 : vector<8x32xf32>
    %57 = arith.mulf %56, %54 : vector<8x32xf32>
    %58 = arith.mulf %48, %35 : vector<8x32xf32>
    %59 = arith.addf %57, %58 : vector<8x32xf32>
    %60 = arith.truncf %59 : vector<8x32xf32> to vector<8x32xbf16>
    %cst_14 = arith.constant dense<0.000000e+00> : vector<8x96xf32>
    %61 = tpu.matmul %60, %7, %cst_14 {dimension_numbers = #tpu.dot_dimension_numbers<[1], [0], [0], [1], [0, 0, 1, 1], [], []>} : vector<8x32xbf16>, vector<32x96xbf16>, vector<8x96xf32> -> vector<8x96xf32>
    %62 = vector.extract_strided_slice %6 {offsets = [40, 0], sizes = [8, 96], strides = [1, 1]} : vector<64x96xf32> to vector<8x96xf32>
    %63 = vector.extract_strided_slice %62 {offsets = [0, 0], sizes = [8, 64], strides = [1, 1]} : vector<8x96xf32> to vector<8x64xf32>
    %64 = vector.extract_strided_slice %61 {offsets = [0, 0], sizes = [8, 64], strides = [1, 1]} : vector<8x96xf32> to vector<8x64xf32>
    %65 = arith.addf %63, %64 : vector<8x64xf32>
    %66 = arith.negf %65 : vector<8x64xf32>
    %67 = math.exp %66 : vector<8x64xf32>
    %cst_15 = arith.constant 1.000000e+00 : f32
    %68 = vector.broadcast %cst_15 : f32 to vector<8x64xf32>
    %69 = arith.addf %68, %67 : vector<8x64xf32>
    %70 = arith.divf %68, %69 : vector<8x64xf32>
    %71 = vector.extract_strided_slice %70 {offsets = [0, 0], sizes = [8, 32], strides = [1, 1]} : vector<8x64xf32> to vector<8x32xf32>
    %72 = vector.extract_strided_slice %70 {offsets = [0, 32], sizes = [8, 32], strides = [1, 1]} : vector<8x64xf32> to vector<8x32xf32>
    %73 = vector.extract_strided_slice %62 {offsets = [0, 64], sizes = [8, 32], strides = [1, 1]} : vector<8x96xf32> to vector<8x32xf32>
    %74 = vector.extract_strided_slice %61 {offsets = [0, 64], sizes = [8, 32], strides = [1, 1]} : vector<8x96xf32> to vector<8x32xf32>
    %75 = arith.addf %74, %10 : vector<8x32xf32>
    %76 = arith.mulf %71, %75 : vector<8x32xf32>
    %77 = arith.addf %73, %76 : vector<8x32xf32>
    %78 = math.tanh %77 : vector<8x32xf32>
    %cst_16 = arith.constant 1.000000e+00 : f32
    %79 = vector.broadcast %cst_16 : f32 to vector<8x32xf32>
    %80 = arith.subf %79, %72 : vector<8x32xf32>
    %81 = arith.mulf %80, %78 : vector<8x32xf32>
    %82 = arith.mulf %72, %59 : vector<8x32xf32>
    %83 = arith.addf %81, %82 : vector<8x32xf32>
    %84 = arith.truncf %83 : vector<8x32xf32> to vector<8x32xbf16>
    %cst_17 = arith.constant dense<0.000000e+00> : vector<8x96xf32>
    %85 = tpu.matmul %84, %7, %cst_17 {dimension_numbers = #tpu.dot_dimension_numbers<[1], [0], [0], [1], [0, 0, 1, 1], [], []>} : vector<8x32xbf16>, vector<32x96xbf16>, vector<8x96xf32> -> vector<8x96xf32>
    %86 = vector.extract_strided_slice %6 {offsets = [32, 0], sizes = [8, 96], strides = [1, 1]} : vector<64x96xf32> to vector<8x96xf32>
    %87 = vector.extract_strided_slice %86 {offsets = [0, 0], sizes = [8, 64], strides = [1, 1]} : vector<8x96xf32> to vector<8x64xf32>
    %88 = vector.extract_strided_slice %85 {offsets = [0, 0], sizes = [8, 64], strides = [1, 1]} : vector<8x96xf32> to vector<8x64xf32>
    %89 = arith.addf %87, %88 : vector<8x64xf32>
    %90 = arith.negf %89 : vector<8x64xf32>
    %91 = math.exp %90 : vector<8x64xf32>
    %cst_18 = arith.constant 1.000000e+00 : f32
    %92 = vector.broadcast %cst_18 : f32 to vector<8x64xf32>
    %93 = arith.addf %92, %91 : vector<8x64xf32>
    %94 = arith.divf %92, %93 : vector<8x64xf32>
    %95 = vector.extract_strided_slice %94 {offsets = [0, 0], sizes = [8, 32], strides = [1, 1]} : vector<8x64xf32> to vector<8x32xf32>
    %96 = vector.extract_strided_slice %94 {offsets = [0, 32], sizes = [8, 32], strides = [1, 1]} : vector<8x64xf32> to vector<8x32xf32>
    %97 = vector.extract_strided_slice %86 {offsets = [0, 64], sizes = [8, 32], strides = [1, 1]} : vector<8x96xf32> to vector<8x32xf32>
    %98 = vector.extract_strided_slice %85 {offsets = [0, 64], sizes = [8, 32], strides = [1, 1]} : vector<8x96xf32> to vector<8x32xf32>
    %99 = arith.addf %98, %10 : vector<8x32xf32>
    %100 = arith.mulf %95, %99 : vector<8x32xf32>
    %101 = arith.addf %97, %100 : vector<8x32xf32>
    %102 = math.tanh %101 : vector<8x32xf32>
    %cst_19 = arith.constant 1.000000e+00 : f32
    %103 = vector.broadcast %cst_19 : f32 to vector<8x32xf32>
    %104 = arith.subf %103, %96 : vector<8x32xf32>
    %105 = arith.mulf %104, %102 : vector<8x32xf32>
    %106 = arith.mulf %96, %83 : vector<8x32xf32>
    %107 = arith.addf %105, %106 : vector<8x32xf32>
    %108 = arith.truncf %107 : vector<8x32xf32> to vector<8x32xbf16>
    %cst_20 = arith.constant dense<0.000000e+00> : vector<8x96xf32>
    %109 = tpu.matmul %108, %7, %cst_20 {dimension_numbers = #tpu.dot_dimension_numbers<[1], [0], [0], [1], [0, 0, 1, 1], [], []>} : vector<8x32xbf16>, vector<32x96xbf16>, vector<8x96xf32> -> vector<8x96xf32>
    %110 = vector.extract_strided_slice %6 {offsets = [24, 0], sizes = [8, 96], strides = [1, 1]} : vector<64x96xf32> to vector<8x96xf32>
    %111 = vector.extract_strided_slice %110 {offsets = [0, 0], sizes = [8, 64], strides = [1, 1]} : vector<8x96xf32> to vector<8x64xf32>
    %112 = vector.extract_strided_slice %109 {offsets = [0, 0], sizes = [8, 64], strides = [1, 1]} : vector<8x96xf32> to vector<8x64xf32>
    %113 = arith.addf %111, %112 : vector<8x64xf32>
    %114 = arith.negf %113 : vector<8x64xf32>
    %115 = math.exp %114 : vector<8x64xf32>
    %cst_21 = arith.constant 1.000000e+00 : f32
    %116 = vector.broadcast %cst_21 : f32 to vector<8x64xf32>
    %117 = arith.addf %116, %115 : vector<8x64xf32>
    %118 = arith.divf %116, %117 : vector<8x64xf32>
    %119 = vector.extract_strided_slice %118 {offsets = [0, 0], sizes = [8, 32], strides = [1, 1]} : vector<8x64xf32> to vector<8x32xf32>
    %120 = vector.extract_strided_slice %118 {offsets = [0, 32], sizes = [8, 32], strides = [1, 1]} : vector<8x64xf32> to vector<8x32xf32>
    %121 = vector.extract_strided_slice %110 {offsets = [0, 64], sizes = [8, 32], strides = [1, 1]} : vector<8x96xf32> to vector<8x32xf32>
    %122 = vector.extract_strided_slice %109 {offsets = [0, 64], sizes = [8, 32], strides = [1, 1]} : vector<8x96xf32> to vector<8x32xf32>
    %123 = arith.addf %122, %10 : vector<8x32xf32>
    %124 = arith.mulf %119, %123 : vector<8x32xf32>
    %125 = arith.addf %121, %124 : vector<8x32xf32>
    %126 = math.tanh %125 : vector<8x32xf32>
    %cst_22 = arith.constant 1.000000e+00 : f32
    %127 = vector.broadcast %cst_22 : f32 to vector<8x32xf32>
    %128 = arith.subf %127, %120 : vector<8x32xf32>
    %129 = arith.mulf %128, %126 : vector<8x32xf32>
    %130 = arith.mulf %120, %107 : vector<8x32xf32>
    %131 = arith.addf %129, %130 : vector<8x32xf32>
    %132 = arith.truncf %131 : vector<8x32xf32> to vector<8x32xbf16>
    %cst_23 = arith.constant dense<0.000000e+00> : vector<8x96xf32>
    %133 = tpu.matmul %132, %7, %cst_23 {dimension_numbers = #tpu.dot_dimension_numbers<[1], [0], [0], [1], [0, 0, 1, 1], [], []>} : vector<8x32xbf16>, vector<32x96xbf16>, vector<8x96xf32> -> vector<8x96xf32>
    %134 = vector.extract_strided_slice %6 {offsets = [16, 0], sizes = [8, 96], strides = [1, 1]} : vector<64x96xf32> to vector<8x96xf32>
    %135 = vector.extract_strided_slice %134 {offsets = [0, 0], sizes = [8, 64], strides = [1, 1]} : vector<8x96xf32> to vector<8x64xf32>
    %136 = vector.extract_strided_slice %133 {offsets = [0, 0], sizes = [8, 64], strides = [1, 1]} : vector<8x96xf32> to vector<8x64xf32>
    %137 = arith.addf %135, %136 : vector<8x64xf32>
    %138 = arith.negf %137 : vector<8x64xf32>
    %139 = math.exp %138 : vector<8x64xf32>
    %cst_24 = arith.constant 1.000000e+00 : f32
    %140 = vector.broadcast %cst_24 : f32 to vector<8x64xf32>
    %141 = arith.addf %140, %139 : vector<8x64xf32>
    %142 = arith.divf %140, %141 : vector<8x64xf32>
    %143 = vector.extract_strided_slice %142 {offsets = [0, 0], sizes = [8, 32], strides = [1, 1]} : vector<8x64xf32> to vector<8x32xf32>
    %144 = vector.extract_strided_slice %142 {offsets = [0, 32], sizes = [8, 32], strides = [1, 1]} : vector<8x64xf32> to vector<8x32xf32>
    %145 = vector.extract_strided_slice %134 {offsets = [0, 64], sizes = [8, 32], strides = [1, 1]} : vector<8x96xf32> to vector<8x32xf32>
    %146 = vector.extract_strided_slice %133 {offsets = [0, 64], sizes = [8, 32], strides = [1, 1]} : vector<8x96xf32> to vector<8x32xf32>
    %147 = arith.addf %146, %10 : vector<8x32xf32>
    %148 = arith.mulf %143, %147 : vector<8x32xf32>
    %149 = arith.addf %145, %148 : vector<8x32xf32>
    %150 = math.tanh %149 : vector<8x32xf32>
    %cst_25 = arith.constant 1.000000e+00 : f32
    %151 = vector.broadcast %cst_25 : f32 to vector<8x32xf32>
    %152 = arith.subf %151, %144 : vector<8x32xf32>
    %153 = arith.mulf %152, %150 : vector<8x32xf32>
    %154 = arith.mulf %144, %131 : vector<8x32xf32>
    %155 = arith.addf %153, %154 : vector<8x32xf32>
    %156 = arith.truncf %155 : vector<8x32xf32> to vector<8x32xbf16>
    %cst_26 = arith.constant dense<0.000000e+00> : vector<8x96xf32>
    %157 = tpu.matmul %156, %7, %cst_26 {dimension_numbers = #tpu.dot_dimension_numbers<[1], [0], [0], [1], [0, 0, 1, 1], [], []>} : vector<8x32xbf16>, vector<32x96xbf16>, vector<8x96xf32> -> vector<8x96xf32>
    %158 = vector.extract_strided_slice %6 {offsets = [8, 0], sizes = [8, 96], strides = [1, 1]} : vector<64x96xf32> to vector<8x96xf32>
    %159 = vector.extract_strided_slice %158 {offsets = [0, 0], sizes = [8, 64], strides = [1, 1]} : vector<8x96xf32> to vector<8x64xf32>
    %160 = vector.extract_strided_slice %157 {offsets = [0, 0], sizes = [8, 64], strides = [1, 1]} : vector<8x96xf32> to vector<8x64xf32>
    %161 = arith.addf %159, %160 : vector<8x64xf32>
    %162 = arith.negf %161 : vector<8x64xf32>
    %163 = math.exp %162 : vector<8x64xf32>
    %cst_27 = arith.constant 1.000000e+00 : f32
    %164 = vector.broadcast %cst_27 : f32 to vector<8x64xf32>
    %165 = arith.addf %164, %163 : vector<8x64xf32>
    %166 = arith.divf %164, %165 : vector<8x64xf32>
    %167 = vector.extract_strided_slice %166 {offsets = [0, 0], sizes = [8, 32], strides = [1, 1]} : vector<8x64xf32> to vector<8x32xf32>
    %168 = vector.extract_strided_slice %166 {offsets = [0, 32], sizes = [8, 32], strides = [1, 1]} : vector<8x64xf32> to vector<8x32xf32>
    %169 = vector.extract_strided_slice %158 {offsets = [0, 64], sizes = [8, 32], strides = [1, 1]} : vector<8x96xf32> to vector<8x32xf32>
    %170 = vector.extract_strided_slice %157 {offsets = [0, 64], sizes = [8, 32], strides = [1, 1]} : vector<8x96xf32> to vector<8x32xf32>
    %171 = arith.addf %170, %10 : vector<8x32xf32>
    %172 = arith.mulf %167, %171 : vector<8x32xf32>
    %173 = arith.addf %169, %172 : vector<8x32xf32>
    %174 = math.tanh %173 : vector<8x32xf32>
    %cst_28 = arith.constant 1.000000e+00 : f32
    %175 = vector.broadcast %cst_28 : f32 to vector<8x32xf32>
    %176 = arith.subf %175, %168 : vector<8x32xf32>
    %177 = arith.mulf %176, %174 : vector<8x32xf32>
    %178 = arith.mulf %168, %155 : vector<8x32xf32>
    %179 = arith.addf %177, %178 : vector<8x32xf32>
    %180 = arith.truncf %179 : vector<8x32xf32> to vector<8x32xbf16>
    %cst_29 = arith.constant dense<0.000000e+00> : vector<8x96xf32>
    %181 = tpu.matmul %180, %7, %cst_29 {dimension_numbers = #tpu.dot_dimension_numbers<[1], [0], [0], [1], [0, 0, 1, 1], [], []>} : vector<8x32xbf16>, vector<32x96xbf16>, vector<8x96xf32> -> vector<8x96xf32>
    %182 = vector.extract_strided_slice %6 {offsets = [0, 0], sizes = [8, 96], strides = [1, 1]} : vector<64x96xf32> to vector<8x96xf32>
    %183 = vector.extract_strided_slice %182 {offsets = [0, 0], sizes = [8, 64], strides = [1, 1]} : vector<8x96xf32> to vector<8x64xf32>
    %184 = vector.extract_strided_slice %181 {offsets = [0, 0], sizes = [8, 64], strides = [1, 1]} : vector<8x96xf32> to vector<8x64xf32>
    %185 = arith.addf %183, %184 : vector<8x64xf32>
    %186 = arith.negf %185 : vector<8x64xf32>
    %187 = math.exp %186 : vector<8x64xf32>
    %cst_30 = arith.constant 1.000000e+00 : f32
    %188 = vector.broadcast %cst_30 : f32 to vector<8x64xf32>
    %189 = arith.addf %188, %187 : vector<8x64xf32>
    %190 = arith.divf %188, %189 : vector<8x64xf32>
    %191 = vector.extract_strided_slice %190 {offsets = [0, 0], sizes = [8, 32], strides = [1, 1]} : vector<8x64xf32> to vector<8x32xf32>
    %192 = vector.extract_strided_slice %190 {offsets = [0, 32], sizes = [8, 32], strides = [1, 1]} : vector<8x64xf32> to vector<8x32xf32>
    %193 = vector.extract_strided_slice %182 {offsets = [0, 64], sizes = [8, 32], strides = [1, 1]} : vector<8x96xf32> to vector<8x32xf32>
    %194 = vector.extract_strided_slice %181 {offsets = [0, 64], sizes = [8, 32], strides = [1, 1]} : vector<8x96xf32> to vector<8x32xf32>
    %195 = arith.addf %194, %10 : vector<8x32xf32>
    %196 = arith.mulf %191, %195 : vector<8x32xf32>
    %197 = arith.addf %193, %196 : vector<8x32xf32>
    %198 = math.tanh %197 : vector<8x32xf32>
    %cst_31 = arith.constant 1.000000e+00 : f32
    %199 = vector.broadcast %cst_31 : f32 to vector<8x32xf32>
    %200 = arith.subf %199, %192 : vector<8x32xf32>
    %201 = arith.mulf %200, %198 : vector<8x32xf32>
    %202 = arith.mulf %192, %179 : vector<8x32xf32>
    %203 = arith.addf %201, %202 : vector<8x32xf32>
    %c0_32 = arith.constant 0 : index
    %c0_33 = arith.constant 0 : index
    %204 = vector.load %arg6[%c0_32, %c0_33] : memref<8x32xf32, #tpu.memory_space<vmem>>, vector<8x32xf32>
    %205 = arith.mulf %203, %204 : vector<8x32xf32>
    %206 = arith.truncf %205 : vector<8x32xf32> to vector<8x32xbf16>
    %c0_34 = arith.constant 0 : index
    %c0_35 = arith.constant 0 : index
    %207 = vector.load %arg4[%c0_34, %c0_35] : memref<32x2xbf16, #tpu.memory_space<vmem>>, vector<32x2xbf16>
    %cst_36 = arith.constant dense<0.000000e+00> : vector<8x2xf32>
    %208 = tpu.matmul %206, %207, %cst_36 {dimension_numbers = #tpu.dot_dimension_numbers<[1], [0], [0], [1], [0, 0, 1, 1], [], []>} : vector<8x32xbf16>, vector<32x2xbf16>, vector<8x2xf32> -> vector<8x2xf32>
    %c0_37 = arith.constant 0 : index
    %c0_38 = arith.constant 0 : index
    %209 = vector.load %arg5[%c0_37, %c0_38] : memref<1x2xf32, #tpu.memory_space<vmem>>, vector<1x2xf32>
    %210 = vector.broadcast %209 : vector<1x2xf32> to vector<8x2xf32>
    %211 = arith.addf %208, %210 : vector<8x2xf32>
    %212 = vector.extract_strided_slice %211 {offsets = [0, 0], sizes = [2, 2], strides = [1, 1]} : vector<8x2xf32> to vector<2x2xf32>
    %c0_39 = arith.constant 0 : index
    %c0_40 = arith.constant 0 : index
    %213 = vector.load %arg7[%c0_39, %c0_40] : memref<2x2xf32, #tpu.memory_space<vmem>>, vector<2x2xf32>
    tpu.vector_store %arg7[%c0_39, %c0_40], %212 {strides = array<i32>} : memref<2x2xf32, #tpu.memory_space<vmem>>, vector<2x2xf32>,
    return
  }
}

</mosaic_0001>

<bundles_post_ra>
// kernel: rnn_classifier_forward.1
= control target key start
LH: loop header
LB: loop body
LE: loop exit
PB: predicated region body
PF: predicated region fallthrough
CT: control target
= control target key end

     0   :  { %vm77_vm0 = vcmask 1041408   ;;  %v1078_v2 = vmov 0.0   ;;  %vm64_vm1 = vcmask 31744   ;;  %vm1079_vm2 = vmmov 0   ;;  %s1313_s0 = inlined_call_operand.vmem [shape: bf16[64,4], index: 0, kind: input, shape index: {}]   ;;  %s1314_s1 = inlined_call_operand.vmem [shape: bf16[4,96], index: 1, kind: input, shape index: {}]   ;;  %s1315_s2 = inlined_call_operand.vmem [shape: bf16[32,96], index: 2, kind: input, shape index: {}]   ;;  %s1316_s3 = inlined_call_operand.vmem [shape: f32[1,128], index: 3, kind: input, shape index: {}]   ;;  %s1317_s4 = inlined_call_operand.vmem [shape: bf16[32,2], index: 4, kind: input, shape index: {}]   ;;  %s1318_s5 = inlined_call_operand.vmem [shape: f32[1,2], index: 5, kind: input, shape index: {}]   ;;  %s1319_s6 = inlined_call_operand.vmem [shape: f32[8,32], index: 6, kind: input, shape index: {}]   ;;  %s1320_s7 = inlined_call_operand.hbm [shape: f32[2,2], index: 7, kind: output, shape index: {}]  }
   0x1   :  { %v37_v0 = vld [vmem:[%s1314_s1] sm:$0x3]  ;;  %918 = vmatprep.subr.bf16.mxu1 %v1078_v2  ;;  %v1000_v5 = vld [vmem:[%s1313_s0 + $0x8] sm:$0xff]   ;;  %922 = vmatprep.mubr.msk.bf16.mxu1 %vm1079_vm2, %v1078_v2  ;;  %v1002_v7 = vld [vmem:[%s1313_s0 + $0x10] sm:$0xff]  }
   0x2   :  { %990 = vmatprep.subr.msk.bf16.mxu0 %vm77_vm0, %v37_v0  ;;  %v79_v1 = vsel %vm77_vm0, %v37_v0, 0  ;;  %v1132_v3 = vld [vmem:[%s1315_s2] sm:$0xff]   ;;  %v1147_v6 = vld [vmem:[%s1315_s2 + $0x8] sm:$0xff]   ;;  %s1080_s2 = smov 96  }
   0x3   :  { %909 = vmatpush3.bf16.msra.mxu0 %v79_v1  ;;  %v999_v4 = vld [vmem:[%s1313_s0] sm:$0xff]   ;;  %919 = vmatpush3.bf16.msra.mxu1 %v1132_v3 }
   0x4   :  { %934 = vmatprep.subr.bf16.mxu0 %v1078_v2  ;;  %910 = vmatprep.mubr.msk.bf16.mxu0 %vm64_vm1, %v999_v4  ;;  %v1158_v8 = vld [vmem:[%s1316_s3] ss:$0 sm:$0xff] }
   0x5   :  { %920 = vmatprep.subr.bf16.mxu1 %v1078_v2  ;;  %213 = vrot.lane.b32.xlu0 %v1158_v8, %s1080_s2 }
   0x6   :  { %911 = vmatmul.mubr.msk.bf16.vlgmr.msra.gmra.mrb[0].mxu0 %vm64_vm1, %v1000_v5 }
   0x7   :  { %935 = vmatpush3.bf16.msra.mxu0 %v1132_v3  ;;  %921 = vmatpush3.bf16.msra.mxu1 %v1147_v6 }
   0x8   :  { %914 = vmatprep.mubr.msk.bf16.mxu0 %vm64_vm1, %v1002_v7  ;;  %926 = vmatprep.subr.bf16.mxu1 %v1078_v2 }
   0x9   :  { %12 = vsyncpa [#allocation3], 0  ;;  %v1003_v9 = vld [vmem:[%s1313_s0 + $0x18] sm:$0xff]   ;;  %936 = vmatprep.subr.bf16.mxu0 %v1078_v2  ;;  %v1081_v10 = vmov 0   ;;  %s1082_s0 = smov 64   ;;  %vm162_vm3 = vcmask 261120  }
   0xa   :  { %923 = vmatmul.mubr.bf16.vlgmr.msra.gmra.mrb[0].mxu1 %v1081_v10  ;;  %s1083_s17 = smov 32   ;;  %s1084_s22 = smov [#allocation2]   ;;  %vm830_vm4 = vcmask 9216  }
   0xb   :  { %937 = vmatpush3.bf16.msra.mxu0 %v1147_v6  ;;  %927 = vmatpush3.bf16.msra.mxu1 %v1132_v3  ;;  %s838_s23 = sshll.u32 %s1084_s22, 4  ;;  %s839_s23 = int_to_ptr.vmem [resolvable:$true] %s838_s23 }
   0xc   :  { %930 = vmatprep.mubr.msk.bf16.mxu1 %vm1079_vm2, %v1078_v2  ;;  %928 = vmatprep.subr.bf16.mxu1 %v1078_v2  ;;  %s1054_s24 = scalar_lea.vmem %s839_s23, 32  ;;  %p1059_p1 = scmp.lt.s32.totalorder %s839_s23, %s839_s23 }
   0xd   :  { %950 = vmatprep.subr.bf16.mxu0 %v1078_v2  ;;  %p1055_p0 = scmp.ne.s32.totalorder %s839_s23, %s1054_s24  ;;  %p1060_p2 = scmp.lt.s32.totalorder %s1054_s24, %s1054_s24 }
   0xe   :  { %915 = vmatmul.mubr.msk.bf16.gmra.mrb[4].mxu0 %vm64_vm1, %v1003_v9 }
   0xf   :  { %938 = vmatprep.mubr.msk.bf16.mxu0 %vm1079_vm2, %v1078_v2  ;;  %929 = vmatpush3.bf16.msra.mxu1 %v1147_v6  ;;  %p1061_p3 = por %p1060_p2, %p1059_p1 }
  0x10   :  { %942 = vmatprep.subr.bf16.mxu1 %v1078_v2 }
  0x11   :  { %p1062_p4 = pnand %p1061_p3, %p1055_p0 }
  0x77   :  { %v1187_v14 = vpop.permute.xlu0 %213 }
  0xd9   :  { %v1181_v11 = vpop.f32.mrb[0].mxu0 }
  0xda   :  { %v1183_v12 = vpop.f32.mrb[1].mxu0 }
  0xdb   :  { %v1185_v13 = vpop.f32.mrb[2].mxu0 }
  0xdc   :  { %v1189_v15 = vpop.f32.mrb[3].mxu0 }
  0xdd   :  { %v200_v16 = vpop.f32.mrb[0].mxu1 }
  0xde   :  { %v924_v17 = vpop.f32.mrb[1].mxu1  ;;  %v216_v18 = vadd.f32 %v1187_v14, %v200_v16 }
  0xdf   :  { %v203_v19 = vpop.f32.mrb[2].mxu1 }
  0xe0   :  { %v925_v20 = vpop.f32.mrb[3].mxu1  ;;  %218 = vrot.lane.b32.xlu0 %v216_v18, %s1082_s0 }
  0xe1   :  { %v916_v21 = vpop.f32.mrb[4].mxu0 }
  0xe2   :  { %v1193_v22 = vpop.f32.mrb[5].mxu0  ;;  %v140_v48 = vadd.f32 %v916_v21, %v1158_v8 }
  0xe3   :  { %v917_v23 = vpop.f32.mrb[6].mxu0 }
  0xe4   :  { %v1195_v24 = vpop.f32.mrb[7].mxu0  ;;  %v143_v25 = vadd.f32 %v917_v23, %v1158_v8 }
  0xe6   :  { %v206_v26 = vadd.f32 %v200_v16, %v143_v25  ;;  %v135_v16 = vadd.f32 %v1158_v8, %v1195_v24 }
  0xe8   :  { %v857_v27 = vmul.f32 -1.442695, %v206_v26 }
  0xea   :  { %1006 = vpow2.f32 %v857_v27 }
  0xf4   :  { %v1007_v28 = vpop.eup %1006 }
  0xf5   :  { %v210_v29 = vadd.f32 1.0, %v1007_v28 }
  0xf7   :  { %1008 = vrcp.f32 %v210_v29 }
 0x101   :  { %v1009_v30 = vpop.eup %1008 }
 0x102   :  { %v228_v36 = vsub.f32 1.0, %v1009_v30  ;;  %v234_v38 = vmul.f32 0.0, %v1009_v30 }
 0x152   :  { %v219_v31 = vpop.permute.xlu0 %218 }
 0x153   :  { %v221_v32 = vmul.f32 %v1009_v30, %v219_v31 }
 0x155   :  { %223 = vrot.lane.b32.xlu1 %v221_v32, %s1082_s0 }
 0x1c7   :  { %v224_v33 = vpop.permute.xlu1 %223 }
 0x1c8   :  { %v226_v34 = vadd.f32 %v224_v33, %v143_v25 }
 0x1ca   :  { %1010 = vtanh.f32 %v226_v34 }
 0x1d4   :  { %v1011_v35 = vpop.eup %1010 }
 0x1d5   :  { %230 = vrot.lane.b32.xlu1 %v1011_v35, %s1080_s2 }
 0x247   :  { %v231_v37 = vpop.permute.xlu1 %230 }
 0x248   :  { %v233_v39 = vmul.f32 %v231_v37, %v228_v36 }
 0x24a   :  { %v235_v40 = vadd.f32 %v234_v38, %v233_v39 }
 0x24c   :  { %v236_v41 = vpack.c.bf16 %v235_v40, %v235_v40 }
 0x24e   :  { %238 = vrot.lane.b32.xlu0 %v236_v41, %s1080_s2 }
 0x2c0   :  { %v239_v42 = vpop.permute.xlu0 %238 }
 0x2c1   :  { %931 = vmatmul.mubr.msk.bf16.vlgmr.msra.gmra.mrb[4].mxu1 %vm162_vm3, %v239_v42 }
 0x2c2   :  { %943 = vmatpush3.bf16.msra.mxu1 %v1132_v3  ;;  %946 = vmatprep.mubr.msk.bf16.mxu1 %vm1079_vm2, %v1078_v2 }
 0x2c3   :  { %944 = vmatprep.subr.bf16.mxu1 %v1078_v2 }
 0x2c6   :  { %945 = vmatpush3.bf16.msra.mxu1 %v1147_v6 }
 0x2c7   :  { %958 = vmatprep.subr.bf16.mxu1 %v1078_v2 }
 0x394   :  { %v277_v43 = vpop.f32.mrb[4].mxu1 }
 0x395   :  { %v290_v44 = vadd.f32 %v277_v43, %v1187_v14  ;;  %v932_v45 = vpop.f32.mrb[5].mxu1  ;;  %v283_v49 = vadd.f32 %v277_v43, %v140_v48 }
 0x396   :  { %v280_v46 = vpop.f32.mrb[6].mxu1 }
 0x397   :  { %292 = vrot.lane.b32.xlu1 %v290_v44, %s1082_s0  ;;  %v933_v47 = vpop.f32.mrb[7].mxu1  ;;  %v859_v50 = vmul.f32 -1.442695, %v283_v49 }
 0x399   :  { %1012 = vpow2.f32 %v859_v50 }
 0x3a3   :  { %v1013_v51 = vpop.eup %1012 }
 0x3a4   :  { %v287_v52 = vadd.f32 1.0, %v1013_v51 }
 0x3a6   :  { %1014 = vrcp.f32 %v287_v52 }
 0x3b0   :  { %v1015_v53 = vpop.eup %1014 }
 0x3b1   :  { %v302_v59 = vsub.f32 1.0, %v1015_v53  ;;  %v308_v61 = vmul.f32 %v1015_v53, %v235_v40  ;;  %v132_v40 = vadd.f32 %v1158_v8, %v1193_v22 }
 0x409   :  { %v293_v54 = vpop.permute.xlu1 %292 }
 0x40a   :  { %v295_v55 = vmul.f32 %v1015_v53, %v293_v54 }
 0x40c   :  { %297 = vrot.lane.b32.xlu0 %v295_v55, %s1082_s0 }
 0x47e   :  { %v298_v56 = vpop.permute.xlu0 %297 }
 0x47f   :  { %v300_v57 = vadd.f32 %v298_v56, %v140_v48 }
 0x481   :  { %1016 = vtanh.f32 %v300_v57 }
 0x48b   :  { %v1017_v58 = vpop.eup %1016 }
 0x48c   :  { %304 = vrot.lane.b32.xlu1 %v1017_v58, %s1080_s2 }
 0x4fe   :  { %v305_v60 = vpop.permute.xlu1 %304 }
 0x4ff   :  { %v307_v62 = vmul.f32 %v305_v60, %v302_v59 }
 0x501   :  { %v309_v63 = vadd.f32 %v308_v61, %v307_v62  ;;  %v127_v62 = vadd.f32 %v1185_v13, %v1158_v8 }
 0x503   :  { %v310_v0 = vpack.c.bf16 %v309_v63, %v309_v63 }
 0x505   :  { %312 = vrot.lane.b32.xlu0 %v310_v0, %s1080_s2 }
 0x577   :  { %v313_v1 = vpop.permute.xlu0 %312 }
 0x578   :  { %939 = vmatmul.mubr.msk.bf16.vlgmr.msra.gmra.mrb[8].mxu0 %vm162_vm3, %v313_v1 }
 0x579   :  { %951 = vmatpush3.bf16.msra.mxu0 %v1132_v3  ;;  %954 = vmatprep.mubr.msk.bf16.mxu0 %vm1079_vm2, %v1078_v2 }
 0x57a   :  { %952 = vmatprep.subr.bf16.mxu0 %v1078_v2 }
 0x57d   :  { %953 = vmatpush3.bf16.msra.mxu0 %v1147_v6 }
 0x57e   :  { %966 = vmatprep.subr.bf16.mxu0 %v1078_v2 }
 0x64b   :  { %v351_v4 = vpop.f32.mrb[8].mxu0 }
 0x64c   :  { %v364_v5 = vadd.f32 %v351_v4, %v1187_v14  ;;  %v940_v7 = vpop.f32.mrb[9].mxu0  ;;  %v357_v17 = vadd.f32 %v351_v4, %v135_v16 }
 0x64d   :  { %v354_v9 = vpop.f32.mrb[10].mxu0 }
 0x64e   :  { %366 = vrot.lane.b32.xlu1 %v364_v5, %s1082_s0  ;;  %v941_v10 = vpop.f32.mrb[11].mxu0  ;;  %v861_v18 = vmul.f32 -1.442695, %v357_v17 }
 0x650   :  { %1018 = vpow2.f32 %v861_v18 }
 0x65a   :  { %v1019_v19 = vpop.eup %1018 }
 0x65b   :  { %v361_v20 = vadd.f32 1.0, %v1019_v19 }
 0x65d   :  { %1020 = vrcp.f32 %v361_v20 }
 0x667   :  { %v1021_v21 = vpop.eup %1020 }
 0x668   :  { %v376_v29 = vsub.f32 1.0, %v1021_v21  ;;  %v382_v24 = vmul.f32 %v1021_v21, %v309_v63 }
 0x6c0   :  { %v367_v23 = vpop.permute.xlu1 %366 }
 0x6c1   :  { %v369_v25 = vmul.f32 %v1021_v21, %v367_v23 }
 0x6c3   :  { %371 = vrot.lane.b32.xlu0 %v369_v25, %s1082_s0 }
 0x735   :  { %v372_v26 = vpop.permute.xlu0 %371 }
 0x736   :  { %v374_v27 = vadd.f32 %v372_v26, %v135_v16 }
 0x738   :  { %1022 = vtanh.f32 %v374_v27 }
 0x742   :  { %v1023_v28 = vpop.eup %1022 }
 0x743   :  { %378 = vrot.lane.b32.xlu1 %v1023_v28, %s1080_s2 }
 0x7b5   :  { %v379_v30 = vpop.permute.xlu1 %378 }
 0x7b6   :  { %v381_v31 = vmul.f32 %v379_v30, %v376_v29 }
 0x7b8   :  { %v383_v32 = vadd.f32 %v382_v24, %v381_v31  ;;  %v124_v24 = vadd.f32 %v1181_v11, %v1158_v8 }
 0x7ba   :  { %v384_v33 = vpack.c.bf16 %v383_v32, %v383_v32 }
 0x7bc   :  { %386 = vrot.lane.b32.xlu0 %v384_v33, %s1080_s2 }
 0x82e   :  { %v387_v34 = vpop.permute.xlu0 %386 }
 0x82f   :  { %947 = vmatmul.mubr.msk.bf16.vlgmr.msra.gmra.mrb[8].mxu1 %vm162_vm3, %v387_v34 }
 0x830   :  { %959 = vmatpush3.bf16.msra.mxu1 %v1132_v3  ;;  %962 = vmatprep.mubr.msk.bf16.mxu1 %vm1079_vm2, %v1078_v2 }
 0x831   :  { %960 = vmatprep.subr.bf16.mxu1 %v1078_v2 }
 0x834   :  { %961 = vmatpush3.bf16.msra.mxu1 %v1147_v6 }
 0x835   :  { %974 = vmatprep.subr.bf16.mxu1 %v1078_v2 }
 0x902   :  { %v425_v35 = vpop.f32.mrb[8].mxu1 }
 0x903   :  { %v438_v36 = vadd.f32 %v425_v35, %v1187_v14  ;;  %v948_v37 = vpop.f32.mrb[9].mxu1  ;;  %v431_v41 = vadd.f32 %v425_v35, %v132_v40 }
 0x904   :  { %v428_v38 = vpop.f32.mrb[10].mxu1 }
 0x905   :  { %440 = vrot.lane.b32.xlu1 %v438_v36, %s1082_s0  ;;  %v949_v39 = vpop.f32.mrb[11].mxu1  ;;  %v863_v42 = vmul.f32 -1.442695, %v431_v41 }
 0x907   :  { %1024 = vpow2.f32 %v863_v42 }
 0x911   :  { %v1025_v43 = vpop.eup %1024 }
 0x912   :  { %v435_v44 = vadd.f32 1.0, %v1025_v43 }
 0x914   :  { %1026 = vrcp.f32 %v435_v44 }
 0x91e   :  { %v1027_v45 = vpop.eup %1026 }
 0x91f   :  { %v450_v51 = vsub.f32 1.0, %v1027_v45  ;;  %v456_v22 = vmul.f32 %v1027_v45, %v383_v32 }
 0x977   :  { %v441_v46 = vpop.permute.xlu1 %440 }
 0x978   :  { %v443_v47 = vmul.f32 %v1027_v45, %v441_v46 }
 0x97a   :  { %445 = vrot.lane.b32.xlu0 %v443_v47, %s1082_s0 }
 0x9ec   :  { %v446_v48 = vpop.permute.xlu0 %445 }
 0x9ed   :  { %v448_v49 = vadd.f32 %v446_v48, %v132_v40 }
 0x9ef   :  { %1028 = vtanh.f32 %v448_v49 }
 0x9f9   :  { %v1029_v50 = vpop.eup %1028 }
 0x9fa   :  { %452 = vrot.lane.b32.xlu1 %v1029_v50, %s1080_s2  ;;  %v119_v50 = vadd.f32 %v1158_v8, %v1189_v15 }
 0xa6c   :  { %v453_v52 = vpop.permute.xlu1 %452 }
 0xa6d   :  { %v455_v53 = vmul.f32 %v453_v52, %v450_v51 }
 0xa6f   :  { %v457_v54 = vadd.f32 %v456_v22, %v455_v53 }
 0xa71   :  { %v458_v55 = vpack.c.bf16 %v457_v54, %v457_v54 }
 0xa73   :  { %460 = vrot.lane.b32.xlu0 %v458_v55, %s1080_s2 }
 0xae5   :  { %v461_v56 = vpop.permute.xlu0 %460 }
 0xae6   :  { %955 = vmatmul.mubr.msk.bf16.vlgmr.msra.gmra.mrb[12].mxu0 %vm162_vm3, %v461_v56 }
 0xae7   :  { %967 = vmatpush3.bf16.msra.mxu0 %v1132_v3  ;;  %970 = vmatprep.mubr.msk.bf16.mxu0 %vm1079_vm2, %v1078_v2 }
 0xae8   :  { %968 = vmatprep.subr.bf16.mxu0 %v1078_v2 }
 0xaeb   :  { %969 = vmatpush3.bf16.msra.mxu0 %v1147_v6 }
 0xaec   :  { %982 = vmatprep.subr.bf16.mxu0 %v1078_v2 }
 0xbb9   :  { %v499_v57 = vpop.f32.mrb[12].mxu0 }
 0xbba   :  { %v512_v58 = vadd.f32 %v499_v57, %v1187_v14  ;;  %v956_v59 = vpop.f32.mrb[13].mxu0  ;;  %v505_v63 = vadd.f32 %v499_v57, %v127_v62 }
 0xbbb   :  { %v502_v60 = vpop.f32.mrb[14].mxu0 }
 0xbbc   :  { %514 = vrot.lane.b32.xlu1 %v512_v58, %s1082_s0  ;;  %v957_v61 = vpop.f32.mrb[15].mxu0  ;;  %v865_v0 = vmul.f32 -1.442695, %v505_v63 }
 0xbbe   :  { %1030 = vpow2.f32 %v865_v0 }
 0xbc8   :  { %v1031_v1 = vpop.eup %1030 }
 0xbc9   :  { %v509_v4 = vadd.f32 1.0, %v1031_v1 }
 0xbcb   :  { %1032 = vrcp.f32 %v509_v4 }
 0xbd5   :  { %v1033_v5 = vpop.eup %1032 }
 0xbd6   :  { %v524_v18 = vsub.f32 1.0, %v1033_v5  ;;  %v530_v13 = vmul.f32 %v1033_v5, %v457_v54 }
 0xc2e   :  { %v515_v7 = vpop.permute.xlu1 %514 }
 0xc2f   :  { %v517_v9 = vmul.f32 %v1033_v5, %v515_v7 }
 0xc31   :  { %519 = vrot.lane.b32.xlu0 %v517_v9, %s1082_s0 }
 0xca3   :  { %v520_v10 = vpop.permute.xlu0 %519 }
 0xca4   :  { %v522_v16 = vadd.f32 %v520_v10, %v127_v62 }
 0xca6   :  { %1034 = vtanh.f32 %v522_v16  ;;  %v116_v16 = vadd.f32 %v1158_v8, %v1183_v12  ;;  %v1004_v8 = vld [vmem:[%s1317_s4] sm:$0xff]   ;;  %v1005_v12 = vld [vmem:[%s1317_s4 + $0x8] sm:$0xff]  }
 0xcb0   :  { %v1035_v17 = vpop.eup %1034 }
 0xcb1   :  { %526 = vrot.lane.b32.xlu1 %v1035_v17, %s1080_s2 }
 0xd23   :  { %v527_v19 = vpop.permute.xlu1 %526 }
 0xd24   :  { %v529_v20 = vmul.f32 %v527_v19, %v524_v18 }
 0xd26   :  { %v531_v21 = vadd.f32 %v530_v13, %v529_v20 }
 0xd28   :  { %v532_v23 = vpack.c.bf16 %v531_v21, %v531_v21 }
 0xd2a   :  { %534 = vrot.lane.b32.xlu0 %v532_v23, %s1080_s2 }
 0xd9c   :  { %v535_v25 = vpop.permute.xlu0 %534 }
 0xd9d   :  { %963 = vmatmul.mubr.msk.bf16.vlgmr.msra.gmra.mrb[12].mxu1 %vm162_vm3, %v535_v25 }
 0xd9e   :  { %975 = vmatpush3.bf16.msra.mxu1 %v1132_v3  ;;  %978 = vmatprep.mubr.msk.bf16.mxu1 %vm1079_vm2, %v1078_v2 }
 0xd9f   :  { %976 = vmatprep.subr.bf16.mxu1 %v1078_v2 }
 0xda2   :  { %977 = vmatpush3.bf16.msra.mxu1 %v1147_v6 }
 0xe70   :  { %v573_v26 = vpop.f32.mrb[12].mxu1 }
 0xe71   :  { %v586_v27 = vadd.f32 %v573_v26, %v1187_v14  ;;  %v964_v28 = vpop.f32.mrb[13].mxu1  ;;  %v579_v31 = vadd.f32 %v573_v26, %v124_v24 }
 0xe72   :  { %v576_v29 = vpop.f32.mrb[14].mxu1 }
 0xe73   :  { %588 = vrot.lane.b32.xlu1 %v586_v27, %s1082_s0  ;;  %v965_v30 = vpop.f32.mrb[15].mxu1  ;;  %v867_v3 = vmul.f32 -1.442695, %v579_v31 }
 0xe75   :  { %1036 = vpow2.f32 %v867_v3 }
 0xe7f   :  { %v1037_v32 = vpop.eup %1036 }
 0xe80   :  { %v583_v33 = vadd.f32 1.0, %v1037_v32 }
 0xe82   :  { %1038 = vrcp.f32 %v583_v33 }
 0xe8c   :  { %v1039_v34 = vpop.eup %1038 }
 0xe8d   :  { %v598_v39 = vsub.f32 1.0, %v1039_v34  ;;  %v604_v11 = vmul.f32 %v1039_v34, %v531_v21 }
 0xee5   :  { %v589_v35 = vpop.permute.xlu1 %588 }
 0xee6   :  { %v591_v6 = vmul.f32 %v1039_v34, %v589_v35 }
 0xee8   :  { %593 = vrot.lane.b32.xlu0 %v591_v6, %s1082_s0 }
 0xf5a   :  { %v594_v36 = vpop.permute.xlu0 %593 }
 0xf5b   :  { %v596_v37 = vadd.f32 %v594_v36, %v124_v24 }
 0xf5d   :  { %1040 = vtanh.f32 %v596_v37 }
 0xf67   :  { %v1041_v38 = vpop.eup %1040 }
 0xf68   :  { %600 = vrot.lane.b32.xlu1 %v1041_v38, %s1080_s2 }
 0xfda   :  { %v601_v40 = vpop.permute.xlu1 %600 }
 0xfdb   :  { %v603_v41 = vmul.f32 %v601_v40, %v598_v39 }
 0xfdd   :  { %v605_v42 = vadd.f32 %v604_v11, %v603_v41 }
 0xfdf   :  { %v606_v43 = vpack.c.bf16 %v605_v42, %v605_v42 }
 0xfe1   :  { %608 = vrot.lane.b32.xlu0 %v606_v43, %s1080_s2 }
0x1053   :  { %v609_v44 = vpop.permute.xlu0 %608 }
0x1054   :  { %971 = vmatmul.mubr.msk.bf16.vlgmr.msra.gmra.mrb[16].mxu0 %vm162_vm3, %v609_v44 }
0x1055   :  { %986 = vmatprep.mubr.msk.bf16.mxu0 %vm1079_vm2, %v1078_v2  ;;  %983 = vmatpush3.bf16.msra.mxu0 %v1004_v8 }
0x1056   :  { %984 = vmatprep.subr.bf16.mxu0 %v1078_v2  ;;  %v872_v2 = vld [vmem:[%s1318_s5] ss:$0 sm:$0xff] }
0x1059   :  { %985 = vmatpush3.bf16.msra.mxu0 %v1005_v12 }
0x1127   :  { %v647_v45 = vpop.f32.mrb[16].mxu0 }
0x1128   :  { %v660_v46 = vadd.f32 %v647_v45, %v1187_v14  ;;  %v972_v47 = vpop.f32.mrb[17].mxu0  ;;  %v653_v51 = vadd.f32 %v647_v45, %v119_v50 }
0x1129   :  { %v650_v48 = vpop.f32.mrb[18].mxu0 }
0x112a   :  { %662 = vrot.lane.b32.xlu1 %v660_v46, %s1082_s0  ;;  %v973_v49 = vpop.f32.mrb[19].mxu0  ;;  %v869_v52 = vmul.f32 -1.442695, %v653_v51 }
0x112c   :  { %1042 = vpow2.f32 %v869_v52 }
0x1136   :  { %v1043_v22 = vpop.eup %1042 }
0x1137   :  { %v657_v53 = vadd.f32 1.0, %v1043_v22 }
0x1139   :  { %1044 = vrcp.f32 %v657_v53 }
0x1143   :  { %v1045_v54 = vpop.eup %1044 }
0x1144   :  { %v672_v60 = vsub.f32 1.0, %v1045_v54  ;;  %v678_v15 = vmul.f32 %v1045_v54, %v605_v42 }
0x119c   :  { %v663_v55 = vpop.permute.xlu1 %662 }
0x119d   :  { %v665_v56 = vmul.f32 %v1045_v54, %v663_v55 }
0x119f   :  { %667 = vrot.lane.b32.xlu0 %v665_v56, %s1082_s0 }
0x1211   :  { %v668_v57 = vpop.permute.xlu0 %667 }
0x1212   :  { %v670_v58 = vadd.f32 %v668_v57, %v119_v50 }
0x1214   :  { %1046 = vtanh.f32 %v670_v58 }
0x121e   :  { %v1047_v59 = vpop.eup %1046 }
0x121f   :  { %674 = vrot.lane.b32.xlu1 %v1047_v59, %s1080_s2 }
0x1291   :  { %v675_v61 = vpop.permute.xlu1 %674 }
0x1292   :  { %v677_v62 = vmul.f32 %v675_v61, %v672_v60 }
0x1294   :  { %v679_v63 = vadd.f32 %v678_v15, %v677_v62 }
0x1296   :  { %v680_v0 = vpack.c.bf16 %v679_v63, %v679_v63 }
0x1298   :  { %682 = vrot.lane.b32.xlu0 %v680_v0, %s1080_s2 }
0x130a   :  { %v683_v1 = vpop.permute.xlu0 %682 }
0x130b   :  { %979 = vmatmul.mubr.msk.bf16.vlgmr.msra.gmra.mrb[16].mxu1 %vm162_vm3, %v683_v1 }
0x13de   :  { %v721_v4 = vpop.f32.mrb[16].mxu1 }
0x13df   :  { %v734_v5 = vadd.f32 %v721_v4, %v1187_v14  ;;  %v980_v7 = vpop.f32.mrb[17].mxu1  ;;  %v727_v17 = vadd.f32 %v721_v4, %v116_v16  ;;  %v754_v14 = vld [vmem:[%s1319_s6] sm:$0xff] }
0x13e0   :  { %v724_v9 = vpop.f32.mrb[18].mxu1 }
0x13e1   :  { %736 = vrot.lane.b32.xlu1 %v734_v5, %s1082_s0  ;;  %v981_v10 = vpop.f32.mrb[19].mxu1  ;;  %v871_v18 = vmul.f32 -1.442695, %v727_v17 }
0x13e3   :  { %1048 = vpow2.f32 %v871_v18 }
0x13ed   :  { %v1049_v19 = vpop.eup %1048 }
0x13ee   :  { %v731_v13 = vadd.f32 1.0, %v1049_v19 }
0x13f0   :  { %1050 = vrcp.f32 %v731_v13 }
0x13fa   :  { %v1051_v20 = vpop.eup %1050 }
0x13fb   :  { %v746_v28 = vsub.f32 1.0, %v1051_v20  ;;  %v752_v24 = vmul.f32 %v1051_v20, %v679_v63 }
0x1453   :  { %v737_v21 = vpop.permute.xlu1 %736 }
0x1454   :  { %v739_v23 = vmul.f32 %v1051_v20, %v737_v21 }
0x1456   :  { %741 = vrot.lane.b32.xlu0 %v739_v23, %s1082_s0 }
0x145a   :  { %756 = vrot.lane.b32.xlu0 %v754_v14, %s1083_s17 }
0x14c8   :  { %v742_v25 = vpop.permute.xlu0 %741 }
0x14c9   :  { %v744_v26 = vadd.f32 %v742_v25, %v116_v16 }
0x14cb   :  { %1052 = vtanh.f32 %v744_v26 }
0x14cc   :  { %v757_v31 = vpop.permute.xlu0 %756 }
0x14d5   :  { %v1053_v27 = vpop.eup %1052 }
0x14d6   :  { %748 = vrot.lane.b32.xlu1 %v1053_v27, %s1080_s2 }
0x1548   :  { %v749_v29 = vpop.permute.xlu1 %748 }
0x1549   :  { %v751_v30 = vmul.f32 %v749_v29, %v746_v28 }
0x154b   :  { %v753_v3 = vadd.f32 %v752_v24, %v751_v30 }
0x154d   :  { %v759_v32 = vmul.f32 %v757_v31, %v753_v3 }
0x154f   :  { %v760_v33 = vpack.c.bf16 %v759_v32, %v759_v32 }
0x1551   :  { %773 = vrot.lane.b32.xlu1 %v760_v33, %s1080_s2 }
0x15c3   :  { %v774_v34 = vpop.permute.xlu1 %773 }
0x15c4   :  { %987 = vmatmul.mubr.msk.bf16.vlgmr.msra.gmra.mrb[20].mxu0 %vm162_vm3, %v774_v34 }
0x1697   :  { %v824_v35 = vpop.f32.mrb[20].mxu0 }
0x1698   :  { %v825_v6 = vadd.f32 %v872_v2, %v824_v35  ;;  %v988_v36 = vpop.f32.mrb[21].mxu0 }
0x1699   :  { %v827_v37 = vpop.f32.mrb[22].mxu0 }
0x169a   :  { %v989_v38 = vpop.f32.mrb[23].mxu0  ;;  %831 = vst.msk [vmem:[#allocation2] sm:$0x3] %vm830_vm4, %v825_v6 }
0x169b   :  { %1065 = shalt.err (!%p1062_p4)
}
0x169c   :  { %s1066_s5 = scalar_lea.hbm %s1320_s7, 32 }
0x169d   :  { %p1067_p5 = scmp.ne.s32.totalorder %s1320_s7, %s1066_s5  ;;  %p1070_p6 = scmp.lt.u32.totalorder %s1066_s5, %s1320_s7 }
0x169f   :  { %p1072_p7 = pnand %p1070_p6, %p1067_p5 }
0x16a1   :  { %1075 = shalt.err (!%p1072_p7)
}
0x16a2   :  { %841 = dma.vmem_to_hbm [thread:$0]  %s839_s23, 32, %s1320_s7, [#allocation3]  }
0x16a3   :  { %1076 = dma.done.wait [#allocation3], 32  }
0x16a4   :  { %1077 = vsyncadd [#allocation3], 4294967264 }
0x16a5   :  { %845 = vsyncpa [#allocation3], 1 }

</bundles_post_ra>
